<compile_context>
chip_gen: v6e
topology: v6e:2x2x1
jax: 0.10.0
libtpu: 0.0.40
codegen_flags: <defaults>
</compile_context>

<pallas_src>
import functools

import jax
import jax.numpy as jnp
from jax import lax
from jax.experimental import pallas as pl
from jax.experimental.pallas import tpu as pltpu


# ----------------------------- helpers (glue) --------------------------------
def _comb(a, b):
    num = 1
    for v in range(a, a - b, -1):
        num *= v
    den = 1
    for v in range(b, 0, -1):
        den *= v
    return num // den


def _round_up(x, m):
    return ((x + m - 1) // m) * m


def _gelu_exact(x):
    # matches torch.nn.functional.gelu (erf formulation)
    return 0.5 * x * (1.0 + lax.erf(x * (1.0 / jnp.sqrt(2.0)).astype(x.dtype)))


# ------------------------------- Pallas kernel --------------------------------
def _net_kernel(packed_ref, cards_ref, comb_ref,
                w1sb_ref, w1c_ref, b1_ref,
                w2_ref, b2_ref, w3_ref, b3_ref,
                wo_ref, bo_ref, out_ref, *, n_total_cards):
    packed = packed_ref[...]          # [tb, 3 + 5 + n_belief]  f32
    cards = cards_ref[...]            # [tb, 5]                 int32, -1 = none
    tb, n_cards = cards.shape

    # --- CardEmbedding: counts via 5 VPU compare-adds, then one MXU matmul ----
    iota = lax.broadcasted_iota(jnp.int32, (tb, n_total_cards), 1)
    counts = jnp.zeros((tb, n_total_cards), jnp.float32)
    for i in range(n_cards):          # static, fully unrolled (5 slots)
        ci = cards[:, i:i + 1]        # [tb, 1]; -1 sentinel never matches iota
        counts = counts + (ci == iota).astype(jnp.float32)
    card_emb = jnp.dot(counts, comb_ref[...],
                       preferred_element_type=jnp.float32)       # [tb, D]

    # --- body: merged W1 (card-index rows zeroed) + embedding contribution ----
    h = (jnp.dot(packed, w1sb_ref[...], preferred_element_type=jnp.float32)
         + jnp.dot(card_emb, w1c_ref[...], preferred_element_type=jnp.float32)
         + b1_ref[...])
    h = _gelu_exact(h)
    h = _gelu_exact(jnp.dot(h, w2_ref[...],
                            preferred_element_type=jnp.float32) + b2_ref[...])
    h = _gelu_exact(jnp.dot(h, w3_ref[...],
                            preferred_element_type=jnp.float32) + b3_ref[...])

    # --- output head (lane-dense padded to a 128 multiple) --------------------
    out_ref[...] = (jnp.dot(h, wo_ref[...],
                            preferred_element_type=jnp.float32) + bo_ref[...])


# ----------------------- one-time parameter preparation ----------------------
def prepare_params(params, *, n_suits, n_ranks):
    """Hoisted out of the per-call path: builds the combined embedding table,
    merges the split W1, and zero-pads hidden/output dims to 128 multiples."""
    n_total = n_suits * n_ranks
    idx = jnp.arange(n_total)
    comb = (params["card_tab"]
            + params["rank_tab"][idx // n_suits]
            + params["suit_tab"][idx % n_suits])              # [n_total, D]

    H = params["w2"].shape[0]
    n_out = params["bo"].shape[-1]
    Hp = max(_round_up(H, 128), 128)
    n_out_p = max(_round_up(n_out, 128), 128)

    # W1 over the raw packed-input lanes [state(3) | card idx(5) | beliefs];
    # the 5 card-index rows are zeroed (cards go through the embedding path).
    w1_sb = jnp.concatenate(
        [params["w1s"], jnp.zeros((5, H), jnp.float32), params["w1b"]], axis=0)

    pad_c = lambda w, n: jnp.pad(w, ((0, 0), (0, n - w.shape[1])))
    pad_r = lambda w, n: jnp.pad(w, ((0, n - w.shape[0]), (0, 0)))

    return dict(
        comb=comb,
        w1sb=pad_c(w1_sb, Hp),
        w1c=pad_c(params["w1c"], Hp),
        b1=pad_c(params["b1"], Hp),
        w2=pad_c(pad_r(params["w2"], Hp), Hp),
        b2=pad_c(params["b2"], Hp),
        w3=pad_c(pad_r(params["w3"], Hp), Hp),
        b3=pad_c(params["b3"], Hp),
        wo=pad_c(pad_r(params["wo"], Hp), n_out_p),
        bo=pad_c(params["bo"], n_out_p),
        n_out=n_out,
        n_total=n_total,
    )


# ------------------------------ wrapper (glue) --------------------------------
def net_forward(packed_input, prepared, *, batch_tile=256):
    B, n_in_raw = packed_input.shape
    cards = packed_input[:, 3:8].astype(jnp.int32)    # torch .to(long) trunc

    n_total = prepared["n_total"]
    D = prepared["comb"].shape[-1]
    Hp = prepared["w2"].shape[0]
    n_out_p = prepared["bo"].shape[-1]

    # batch tile: multiple of 8 (sublane), capped at batch_tile
    tb = min(batch_tile, _round_up(B, 8))
    Bp = _round_up(B, tb)
    if Bp != B:
        packed_input = jnp.pad(packed_input, ((0, Bp - B), (0, 0)))
        cards = jnp.pad(cards, ((0, Bp - B), (0, 0)), constant_values=-1)

    weight_names = ("comb", "w1sb", "w1c", "b1",
                    "w2", "b2", "w3", "b3", "wo", "bo")
    weight_args = [prepared[k] for k in weight_names]

    def resident(shape):
        # constant block index -> stays VMEM-resident across the batch grid
        return pl.BlockSpec(shape, lambda i: (0,) * len(shape))

    in_specs = ([pl.BlockSpec((tb, n_in_raw), lambda i: (i, 0)),
                 pl.BlockSpec((tb, cards.shape[1]), lambda i: (i, 0))]
                + [resident(w.shape) for w in weight_args])
    out_specs = pl.BlockSpec((tb, n_out_p), lambda i: (i, 0))

    flops = 2 * Bp * (n_total * D + n_in_raw * Hp + D * Hp
                      + 2 * Hp * Hp + Hp * n_out_p)
    bytes_accessed = 4 * (Bp * (n_in_raw + cards.shape[1] + n_out_p)
                          + sum(int(w.size) for w in weight_args))
    cost = pl.CostEstimate(flops=int(flops),
                           transcendentals=int(3 * Bp * Hp),
                           bytes_accessed=int(bytes_accessed))

    out = pl.pallas_call(
        functools.partial(_net_kernel, n_total_cards=n_total),
        out_shape=jax.ShapeDtypeStruct((Bp, n_out_p), jnp.float32),
        grid_spec=pltpu.PrefetchScalarGridSpec(
            num_scalar_prefetch=0,
            grid=(Bp // tb,),
            in_specs=in_specs,
            out_specs=out_specs),
        compiler_params=pltpu.CompilerParams(
            dimension_semantics=("parallel",),       # megacore-shard batch axis
            vmem_limit_bytes=32 * 1024 * 1024),      # above v5e's 16 MiB default
        cost_estimate=cost,
    )(packed_input, cards, *weight_args)

    return out[:B, :prepared["n_out"]]


# ---------------------- deterministic parameter init --------------------------
def init_params(key, *, n_suits, n_ranks, card_emb_dim, n_hidden,
                n_belief, n_out):
    n_total = n_suits * n_ranks
    n_in = 3 + card_emb_dim + n_belief
    keys = jax.random.split(key, 7)

    def linear(k, fan_in, fan_out, scale=1.0):
        kw, kb = jax.random.split(k)
        bound = 1.0 / jnp.sqrt(jnp.float32(fan_in))
        w = jax.random.uniform(kw, (fan_in, fan_out), jnp.float32,
                               -bound, bound) * scale
        bias = jax.random.uniform(kb, (1, fan_out), jnp.float32,
                                  -bound, bound) * scale
        return w, bias

    card_tab = jax.random.normal(keys[0], (n_total, card_emb_dim), jnp.float32)
    rank_tab = jax.random.normal(keys[1], (n_ranks, card_emb_dim), jnp.float32)
    suit_tab = jax.random.normal(keys[2], (n_suits, card_emb_dim), jnp.float32)
    w1, b1 = linear(keys[3], n_in, n_hidden)
    w2, b2 = linear(keys[4], n_hidden, n_hidden)
    w3, b3 = linear(keys[5], n_hidden, n_hidden)
    wo, bo = linear(keys[6], n_hidden, n_out, scale=0.01)  # *= 0.01 like module
    return dict(card_tab=card_tab, rank_tab=rank_tab, suit_tab=suit_tab,
                w1s=w1[:3], w1c=w1[3:3 + card_emb_dim],
                w1b=w1[3 + card_emb_dim:], b1=b1,
                w2=w2, b2=b2, w3=w3, b3=b3, wo=wo, bo=bo)


# ------------------------- pure-JAX reference ---------------------------------
def net_reference(packed_input, params, *, n_suits, n_ranks):
    state = packed_input[:, :3]
    cards = packed_input[:, 3:8].astype(jnp.int32)
    beliefs = packed_input[:, 8:]
    valid = (cards >= 0).astype(jnp.float32)
    c = jnp.maximum(cards, 0)
    embs = (params["card_tab"][c]
            + params["rank_tab"][c // n_suits]
            + params["suit_tab"][c % n_suits]) * valid[..., None]
    card_emb = embs.sum(axis=1)
    gelu = lambda x: jax.nn.gelu(x, approximate=False)
    h = gelu(state @ params["w1s"] + card_emb @ params["w1c"]
             + beliefs @ params["w1b"] + params["b1"])
    h = gelu(h @ params["w2"] + params["b2"])
    h = gelu(h @ params["w3"] + params["b3"])
    return h @ params["wo"] + params["bo"]


# ----------------------------------- main --------------------------------------
if __name__ == "__main__":
    # Small config consistent with Net.__init__:
    #   n_hole_cards=2, n_deck_cards=8, n_card_suits=2, n_card_ranks=4,
    #   card_emb_dim=32, n_hidden=64, n_layers=3, n_actions=1
    n_suits, n_ranks = 2, 4
    n_hole, n_deck = 2, 8
    card_emb_dim, n_hidden = 32, 64
    n_belief = 2 * _comb(n_deck, n_hole)   # 56
    n_out = _comb(n_deck, n_hole)          # 28
    batch = 4

    key = jax.random.PRNGKey(0)
    kp, ks, kc, kb = jax.random.split(key, 4)
    params = init_params(kp, n_suits=n_suits, n_ranks=n_ranks,
                         card_emb_dim=card_emb_dim, n_hidden=n_hidden,
                         n_belief=n_belief, n_out=n_out)
    prepared = prepare_params(params, n_suits=n_suits, n_ranks=n_ranks)

    # packed_input = [state_info(3) | card indices(5) | beliefs(2*C(8,2))]
    state_info = jax.random.uniform(ks, (batch, 3), jnp.float32)
    cards = jax.random.randint(kc, (batch, 5), -1,
                               n_suits * n_ranks).astype(jnp.float32)
    beliefs = jax.random.uniform(kb, (batch, n_belief), jnp.float32)
    packed_input = jnp.concatenate([state_info, cards, beliefs], axis=1)

    out = net_forward(packed_input, prepared)
    out = jax.block_until_ready(out)

    ref = net_reference(packed_input, params, n_suits=n_suits, n_ranks=n_ranks)
    assert out.shape == (batch, n_out), out.shape
    assert jnp.allclose(out, ref, atol=1e-4, rtol=1e-4), \
        float(jnp.max(jnp.abs(out - ref)))
    print("KERNEL_OK")
</pallas_src>

<mosaic_0001>
module attributes {stable_mosaic.version = 11 : i64} {
  func.func @_net_kernel(%arg0: i32, %arg1: memref<8x64xf32, #tpu.memory_space<vmem>>, %arg2: memref<8x5xi32, #tpu.memory_space<vmem>>, %arg3: memref<8x32xf32, #tpu.memory_space<vmem>>, %arg4: memref<64x128xf32, #tpu.memory_space<vmem>>, %arg5: memref<32x128xf32, #tpu.memory_space<vmem>>, %arg6: memref<1x128xf32, #tpu.memory_space<vmem>>, %arg7: memref<128x128xf32, #tpu.memory_space<vmem>>, %arg8: memref<1x128xf32, #tpu.memory_space<vmem>>, %arg9: memref<128x128xf32, #tpu.memory_space<vmem>>, %arg10: memref<1x128xf32, #tpu.memory_space<vmem>>, %arg11: memref<128x128xf32, #tpu.memory_space<vmem>>, %arg12: memref<1x128xf32, #tpu.memory_space<vmem>>, %arg13: memref<8x128xf32, #tpu.memory_space<vmem>>) attributes {dimension_semantics = [#tpu.dimension_semantics<parallel>], iteration_bounds = array<i64: 1>, scalar_prefetch = 0 : i64, scratch_operands = 0 : i64, tpu.core_type = #tpu.core_type<tc>, window_params = [{transform_indices = @transform_0, window_bounds = array<i64: 8, 64>}, {transform_indices = @transform_1, window_bounds = array<i64: 8, 5>}, {pipeline_mode = #tpu.pipeline_mode<synchronous>, transform_indices = @transform_2, window_bounds = array<i64: 8, 32>}, {pipeline_mode = #tpu.pipeline_mode<synchronous>, transform_indices = @transform_3, window_bounds = array<i64: 64, 128>}, {pipeline_mode = #tpu.pipeline_mode<synchronous>, transform_indices = @transform_4, window_bounds = array<i64: 32, 128>}, {pipeline_mode = #tpu.pipeline_mode<synchronous>, transform_indices = @transform_5, window_bounds = array<i64: 1, 128>}, {pipeline_mode = #tpu.pipeline_mode<synchronous>, transform_indices = @transform_6, window_bounds = array<i64: 128, 128>}, {pipeline_mode = #tpu.pipeline_mode<synchronous>, transform_indices = @transform_7, window_bounds = array<i64: 1, 128>}, {pipeline_mode = #tpu.pipeline_mode<synchronous>, transform_indices = @transform_8, window_bounds = array<i64: 128, 128>}, {pipeline_mode = #tpu.pipeline_mode<synchronous>, transform_indices = @transform_9, window_bounds = array<i64: 1, 128>}, {pipeline_mode = #tpu.pipeline_mode<synchronous>, transform_indices = @transform_10, window_bounds = array<i64: 128, 128>}, {pipeline_mode = #tpu.pipeline_mode<synchronous>, transform_indices = @transform_11, window_bounds = array<i64: 1, 128>}, {transform_indices = @transform_12, window_bounds = array<i64: 8, 128>}]} {
    %c0 = arith.constant 0 : index
    %c0_0 = arith.constant 0 : index
    %0 = vector.load %arg1[%c0, %c0_0] : memref<8x64xf32, #tpu.memory_space<vmem>>, vector<8x64xf32>
    %c0_1 = arith.constant 0 : index
    %c0_2 = arith.constant 0 : index
    %1 = vector.load %arg2[%c0_1, %c0_2] : memref<8x5xi32, #tpu.memory_space<vmem>>, vector<8x5xi32>
    %2 = tpu.iota {dimensions = array<i32: 1>} : vector<8x8xi32>
    %cst = arith.constant 0.000000e+00 : f32
    %3 = vector.broadcast %cst : f32 to vector<8x8xf32>
    %4 = vector.extract_strided_slice %1 {offsets = [0, 0], sizes = [8, 1], strides = [1, 1]} : vector<8x5xi32> to vector<8x1xi32>
    %5 = vector.broadcast %4 : vector<8x1xi32> to vector<8x8xi32>
    %6 = arith.cmpi eq, %5, %2 : vector<8x8xi32>
    %7 = arith.extui %6 : vector<8x8xi1> to vector<8x8xi32>
    %8 = arith.sitofp %7 : vector<8x8xi32> to vector<8x8xf32>
    %9 = arith.addf %3, %8 : vector<8x8xf32>
    %10 = vector.extract_strided_slice %1 {offsets = [0, 1], sizes = [8, 1], strides = [1, 1]} : vector<8x5xi32> to vector<8x1xi32>
    %11 = vector.broadcast %10 : vector<8x1xi32> to vector<8x8xi32>
    %12 = arith.cmpi eq, %11, %2 : vector<8x8xi32>
    %13 = arith.extui %12 : vector<8x8xi1> to vector<8x8xi32>
    %14 = arith.sitofp %13 : vector<8x8xi32> to vector<8x8xf32>
    %15 = arith.addf %9, %14 : vector<8x8xf32>
    %16 = vector.extract_strided_slice %1 {offsets = [0, 2], sizes = [8, 1], strides = [1, 1]} : vector<8x5xi32> to vector<8x1xi32>
    %17 = vector.broadcast %16 : vector<8x1xi32> to vector<8x8xi32>
    %18 = arith.cmpi eq, %17, %2 : vector<8x8xi32>
    %19 = arith.extui %18 : vector<8x8xi1> to vector<8x8xi32>
    %20 = arith.sitofp %19 : vector<8x8xi32> to vector<8x8xf32>
    %21 = arith.addf %15, %20 : vector<8x8xf32>
    %22 = vector.extract_strided_slice %1 {offsets = [0, 3], sizes = [8, 1], strides = [1, 1]} : vector<8x5xi32> to vector<8x1xi32>
    %23 = vector.broadcast %22 : vector<8x1xi32> to vector<8x8xi32>
    %24 = arith.cmpi eq, %23, %2 : vector<8x8xi32>
    %25 = arith.extui %24 : vector<8x8xi1> to vector<8x8xi32>
    %26 = arith.sitofp %25 : vector<8x8xi32> to vector<8x8xf32>
    %27 = arith.addf %21, %26 : vector<8x8xf32>
    %28 = vector.extract_strided_slice %1 {offsets = [0, 4], sizes = [8, 1], strides = [1, 1]} : vector<8x5xi32> to vector<8x1xi32>
    %29 = vector.broadcast %28 : vector<8x1xi32> to vector<8x8xi32>
    %30 = arith.cmpi eq, %29, %2 : vector<8x8xi32>
    %31 = arith.extui %30 : vector<8x8xi1> to vector<8x8xi32>
    %32 = arith.sitofp %31 : vector<8x8xi32> to vector<8x8xf32>
    %33 = arith.addf %27, %32 : vector<8x8xf32>
    %c0_3 = arith.constant 0 : index
    %c0_4 = arith.constant 0 : index
    %34 = vector.load %arg3[%c0_3, %c0_4] : memref<8x32xf32, #tpu.memory_space<vmem>>, vector<8x32xf32>
    %cst_5 = arith.constant dense<0.000000e+00> : vector<8x32xf32>
    %35 = tpu.matmul %33, %34, %cst_5 {dimension_numbers = #tpu.dot_dimension_numbers<[1], [0], [0], [1], [0, 0, 1, 1], [], []>} : vector<8x8xf32>, vector<8x32xf32>, vector<8x32xf32> -> vector<8x32xf32>
    %c0_6 = arith.constant 0 : index
    %c0_7 = arith.constant 0 : index
    %36 = vector.load %arg4[%c0_6, %c0_7] : memref<64x128xf32, #tpu.memory_space<vmem>>, vector<64x128xf32>
    %cst_8 = arith.constant dense<0.000000e+00> : vector<8x128xf32>
    %37 = tpu.matmul %0, %36, %cst_8 {dimension_numbers = #tpu.dot_dimension_numbers<[1], [0], [0], [1], [0, 0, 1, 1], [], []>} : vector<8x64xf32>, vector<64x128xf32>, vector<8x128xf32> -> vector<8x128xf32>
    %c0_9 = arith.constant 0 : index
    %c0_10 = arith.constant 0 : index
    %38 = vector.load %arg5[%c0_9, %c0_10] : memref<32x128xf32, #tpu.memory_space<vmem>>, vector<32x128xf32>
    %cst_11 = arith.constant dense<0.000000e+00> : vector<8x128xf32>
    %39 = tpu.matmul %35, %38, %cst_11 {dimension_numbers = #tpu.dot_dimension_numbers<[1], [0], [0], [1], [0, 0, 1, 1], [], []>} : vector<8x32xf32>, vector<32x128xf32>, vector<8x128xf32> -> vector<8x128xf32>
    %40 = arith.addf %37, %39 : vector<8x128xf32>
    %c0_12 = arith.constant 0 : index
    %c0_13 = arith.constant 0 : index
    %41 = vector.load %arg6[%c0_12, %c0_13] : memref<1x128xf32, #tpu.memory_space<vmem>>, vector<1x128xf32>
    %42 = vector.broadcast %41 : vector<1x128xf32> to vector<8x128xf32>
    %43 = arith.addf %40, %42 : vector<8x128xf32>
    %cst_14 = arith.constant 5.000000e-01 : f32
    %44 = vector.broadcast %cst_14 : f32 to vector<8x128xf32>
    %45 = arith.mulf %44, %43 : vector<8x128xf32>
    %cst_15 = arith.constant 2.000000e+00 : f32
    %46 = math.sqrt %cst_15 : f32
    %cst_16 = arith.constant 1.000000e+00 : f32
    %47 = arith.divf %cst_16, %46 : f32
    %48 = vector.broadcast %47 : f32 to vector<8x128xf32>
    %49 = arith.mulf %43, %48 : vector<8x128xf32>
    %50 = math.erf %49 : vector<8x128xf32>
    %cst_17 = arith.constant 1.000000e+00 : f32
    %51 = vector.broadcast %cst_17 : f32 to vector<8x128xf32>
    %52 = arith.addf %51, %50 : vector<8x128xf32>
    %53 = arith.mulf %45, %52 : vector<8x128xf32>
    %c0_18 = arith.constant 0 : index
    %c0_19 = arith.constant 0 : index
    %54 = vector.load %arg7[%c0_18, %c0_19] : memref<128x128xf32, #tpu.memory_space<vmem>>, vector<128x128xf32>
    %cst_20 = arith.constant dense<0.000000e+00> : vector<8x128xf32>
    %55 = tpu.matmul %53, %54, %cst_20 {dimension_numbers = #tpu.dot_dimension_numbers<[1], [0], [0], [1], [0, 0, 1, 1], [], []>} : vector<8x128xf32>, vector<128x128xf32>, vector<8x128xf32> -> vector<8x128xf32>
    %c0_21 = arith.constant 0 : index
    %c0_22 = arith.constant 0 : index
    %56 = vector.load %arg8[%c0_21, %c0_22] : memref<1x128xf32, #tpu.memory_space<vmem>>, vector<1x128xf32>
    %57 = vector.broadcast %56 : vector<1x128xf32> to vector<8x128xf32>
    %58 = arith.addf %55, %57 : vector<8x128xf32>
    %cst_23 = arith.constant 5.000000e-01 : f32
    %59 = vector.broadcast %cst_23 : f32 to vector<8x128xf32>
    %60 = arith.mulf %59, %58 : vector<8x128xf32>
    %cst_24 = arith.constant 2.000000e+00 : f32
    %61 = math.sqrt %cst_24 : f32
    %cst_25 = arith.constant 1.000000e+00 : f32
    %62 = arith.divf %cst_25, %61 : f32
    %63 = vector.broadcast %62 : f32 to vector<8x128xf32>
    %64 = arith.mulf %58, %63 : vector<8x128xf32>
    %65 = math.erf %64 : vector<8x128xf32>
    %cst_26 = arith.constant 1.000000e+00 : f32
    %66 = vector.broadcast %cst_26 : f32 to vector<8x128xf32>
    %67 = arith.addf %66, %65 : vector<8x128xf32>
    %68 = arith.mulf %60, %67 : vector<8x128xf32>
    %c0_27 = arith.constant 0 : index
    %c0_28 = arith.constant 0 : index
    %69 = vector.load %arg9[%c0_27, %c0_28] : memref<128x128xf32, #tpu.memory_space<vmem>>, vector<128x128xf32>
    %cst_29 = arith.constant dense<0.000000e+00> : vector<8x128xf32>
    %70 = tpu.matmul %68, %69, %cst_29 {dimension_numbers = #tpu.dot_dimension_numbers<[1], [0], [0], [1], [0, 0, 1, 1], [], []>} : vector<8x128xf32>, vector<128x128xf32>, vector<8x128xf32> -> vector<8x128xf32>
    %c0_30 = arith.constant 0 : index
    %c0_31 = arith.constant 0 : index
    %71 = vector.load %arg10[%c0_30, %c0_31] : memref<1x128xf32, #tpu.memory_space<vmem>>, vector<1x128xf32>
    %72 = vector.broadcast %71 : vector<1x128xf32> to vector<8x128xf32>
    %73 = arith.addf %70, %72 : vector<8x128xf32>
    %cst_32 = arith.constant 5.000000e-01 : f32
    %74 = vector.broadcast %cst_32 : f32 to vector<8x128xf32>
    %75 = arith.mulf %74, %73 : vector<8x128xf32>
    %cst_33 = arith.constant 2.000000e+00 : f32
    %76 = math.sqrt %cst_33 : f32
    %cst_34 = arith.constant 1.000000e+00 : f32
    %77 = arith.divf %cst_34, %76 : f32
    %78 = vector.broadcast %77 : f32 to vector<8x128xf32>
    %79 = arith.mulf %73, %78 : vector<8x128xf32>
    %80 = math.erf %79 : vector<8x128xf32>
    %cst_35 = arith.constant 1.000000e+00 : f32
    %81 = vector.broadcast %cst_35 : f32 to vector<8x128xf32>
    %82 = arith.addf %81, %80 : vector<8x128xf32>
    %83 = arith.mulf %75, %82 : vector<8x128xf32>
    %c0_36 = arith.constant 0 : index
    %c0_37 = arith.constant 0 : index
    %84 = vector.load %arg11[%c0_36, %c0_37] : memref<128x128xf32, #tpu.memory_space<vmem>>, vector<128x128xf32>
    %cst_38 = arith.constant dense<0.000000e+00> : vector<8x128xf32>
    %85 = tpu.matmul %83, %84, %cst_38 {dimension_numbers = #tpu.dot_dimension_numbers<[1], [0], [0], [1], [0, 0, 1, 1], [], []>} : vector<8x128xf32>, vector<128x128xf32>, vector<8x128xf32> -> vector<8x128xf32>
    %c0_39 = arith.constant 0 : index
    %c0_40 = arith.constant 0 : index
    %86 = vector.load %arg12[%c0_39, %c0_40] : memref<1x128xf32, #tpu.memory_space<vmem>>, vector<1x128xf32>
    %87 = vector.broadcast %86 : vector<1x128xf32> to vector<8x128xf32>
    %88 = arith.addf %85, %87 : vector<8x128xf32>
    %c0_41 = arith.constant 0 : index
    %c0_42 = arith.constant 0 : index
    %89 = vector.load %arg13[%c0_41, %c0_42] : memref<8x128xf32, #tpu.memory_space<vmem>>, vector<8x128xf32>
    tpu.vector_store %arg13[%c0_41, %c0_42], %88 {strides = array<i32>} : memref<8x128xf32, #tpu.memory_space<vmem>>, vector<8x128xf32>,
    return
  }
  func.func @transform_0(%arg0: i32) -> (i32, i32) {
    %c0_i32 = arith.constant 0 : i32
    %c0_i32_0 = arith.constant 0 : i32
    return %arg0, %c0_i32 : i32, i32
  }
  func.func @transform_1(%arg0: i32) -> (i32, i32) {
    %c0_i32 = arith.constant 0 : i32
    %c0_i32_0 = arith.constant 0 : i32
    return %arg0, %c0_i32 : i32, i32
  }
  func.func @transform_2(%arg0: i32) -> (i32, i32) {
    %c0_i32 = arith.constant 0 : i32
    %c0_i32_0 = arith.constant 0 : i32
    %c0_i32_1 = arith.constant 0 : i32
    return %c0_i32, %c0_i32_0 : i32, i32
  }
  func.func @transform_3(%arg0: i32) -> (i32, i32) {
    %c0_i32 = arith.constant 0 : i32
    %c0_i32_0 = arith.constant 0 : i32
    %c0_i32_1 = arith.constant 0 : i32
    return %c0_i32, %c0_i32_0 : i32, i32
  }
  func.func @transform_4(%arg0: i32) -> (i32, i32) {
    %c0_i32 = arith.constant 0 : i32
    %c0_i32_0 = arith.constant 0 : i32
    %c0_i32_1 = arith.constant 0 : i32
    return %c0_i32, %c0_i32_0 : i32, i32
  }
  func.func @transform_5(%arg0: i32) -> (i32, i32) {
    %c0_i32 = arith.constant 0 : i32
    %c0_i32_0 = arith.constant 0 : i32
    %c0_i32_1 = arith.constant 0 : i32
    return %c0_i32, %c0_i32_0 : i32, i32
  }
  func.func @transform_6(%arg0: i32) -> (i32, i32) {
    %c0_i32 = arith.constant 0 : i32
    %c0_i32_0 = arith.constant 0 : i32
    %c0_i32_1 = arith.constant 0 : i32
    return %c0_i32, %c0_i32_0 : i32, i32
  }
  func.func @transform_7(%arg0: i32) -> (i32, i32) {
    %c0_i32 = arith.constant 0 : i32
    %c0_i32_0 = arith.constant 0 : i32
    %c0_i32_1 = arith.constant 0 : i32
    return %c0_i32, %c0_i32_0 : i32, i32
  }
  func.func @transform_8(%arg0: i32) -> (i32, i32) {
    %c0_i32 = arith.constant 0 : i32
    %c0_i32_0 = arith.constant 0 : i32
    %c0_i32_1 = arith.constant 0 : i32
    return %c0_i32, %c0_i32_0 : i32, i32
  }
  func.func @transform_9(%arg0: i32) -> (i32, i32) {
    %c0_i32 = arith.constant 0 : i32
    %c0_i32_0 = arith.constant 0 : i32
    %c0_i32_1 = arith.constant 0 : i32
    return %c0_i32, %c0_i32_0 : i32, i32
  }
  func.func @transform_10(%arg0: i32) -> (i32, i32) {
    %c0_i32 = arith.constant 0 : i32
    %c0_i32_0 = arith.constant 0 : i32
    %c0_i32_1 = arith.constant 0 : i32
    return %c0_i32, %c0_i32_0 : i32, i32
  }
  func.func @transform_11(%arg0: i32) -> (i32, i32) {
    %c0_i32 = arith.constant 0 : i32
    %c0_i32_0 = arith.constant 0 : i32
    %c0_i32_1 = arith.constant 0 : i32
    return %c0_i32, %c0_i32_0 : i32, i32
  }
  func.func @transform_12(%arg0: i32) -> (i32, i32) {
    %c0_i32 = arith.constant 0 : i32
    %c0_i32_0 = arith.constant 0 : i32
    return %arg0, %c0_i32 : i32, i32
  }
}

</mosaic_0001>

<bundles_post_ra>
// kernel: tpu_custom_call.1
= control target key start
LH: loop header
LB: loop body
LE: loop exit
PB: predicated region body
PF: predicated region fallthrough
CT: control target
= control target key end

     0   :  { %17 = vsyncpa [#allocation3], 0  ;;  %s1397_s0 = inlined_call_operand.hbm [shape: f32[8,64], index: 0, kind: input, shape index: {}]   ;;  %s1398_s1 = inlined_call_operand.hbm [shape: s32[8,5], index: 1, kind: input, shape index: {}]   ;;  %s1399_s2 = inlined_call_operand.hbm [shape: f32[8,32], index: 2, kind: input, shape index: {}]   ;;  %s1400_s3 = inlined_call_operand.hbm [shape: f32[64,128], index: 3, kind: input, shape index: {}]   ;;  %s1401_s4 = inlined_call_operand.hbm [shape: f32[32,128], index: 4, kind: input, shape index: {}]   ;;  %s1402_s5 = inlined_call_operand.vmem [shape: f32[1,128], index: 5, kind: input, shape index: {}]   ;;  %s1403_s6 = inlined_call_operand.hbm [shape: f32[128,128], index: 6, kind: input, shape index: {}]   ;;  %s1404_s7 = inlined_call_operand.vmem [shape: f32[1,128], index: 7, kind: input, shape index: {}]   ;;  %s1405_s8 = inlined_call_operand.hbm [shape: f32[128,128], index: 8, kind: input, shape index: {}]   ;;  %s1406_s9 = inlined_call_operand.vmem [shape: f32[1,128], index: 9, kind: input, shape index: {}]   ;;  %s1407_s10 = inlined_call_operand.hbm [shape: f32[128,128], index: 10, kind: input, shape index: {}]   ;;  %s1408_s11 = inlined_call_operand.vmem [shape: f32[1,128], index: 11, kind: input, shape index: {}]   ;;  %s1409_s12 = inlined_call_operand.hbm [shape: f32[8,128], index: 12, kind: output, shape index: {}]  }
   0x1   :  { %18 = vsyncpa [#allocation6], 0 }
   0x2   :  { %19 = vsyncpa [#allocation9], 0 }
   0x3   :  { %20 = vsyncpa [#allocation12], 0 }
   0x4   :  { %21 = vsyncpa [#allocation15], 0 }
   0x5   :  { %22 = vsyncpa [#allocation4], 0  ;;  %s1182_s21 = smov [#allocation5]   ;;  %s1183_s23 = smov [#allocation8]  }
   0x6   :  { %s39_s22 = sshll.u32 %s1182_s21, 4  ;;  %s58_s24 = sshll.u32 %s1183_s23, 4  ;;  %s40_s22 = int_to_ptr.vmem [resolvable:$true] %s39_s22  ;;  %s59_s24 = int_to_ptr.vmem [resolvable:$true] %s58_s24 }
   0x7   :  { %s998_s25 = scalar_lea.vmem %s40_s22, 128  ;;  %p1003_p1 = scmp.lt.s32.totalorder %s40_s22, %s40_s22 }
   0x8   :  { %p999_p0 = scmp.ne.s32.totalorder %s40_s22, %s998_s25  ;;  %p1004_p2 = scmp.lt.s32.totalorder %s998_s25, %s998_s25 }
   0xa   :  { %p1005_p3 = por %p1004_p2, %p1003_p1 }
   0xc   :  { %p1006_p4 = pnand %p1005_p3, %p999_p0 }
   0xe   :  { %1009 = shalt.err (!%p1006_p4)
}
   0xf   :  { %42 = dma.hbm_to_vmem [thread:$0]  %s1398_s1, 128, %s40_s22, [#allocation6]  }
  0x10   :  { %s1018_s28 = scalar_lea.vmem %s59_s24, 1024  ;;  %p1023_p6 = scmp.lt.s32.totalorder %s59_s24, %s59_s24 }
  0x11   :  { %p1019_p5 = scmp.ne.s32.totalorder %s59_s24, %s1018_s28  ;;  %p1024_p7 = scmp.lt.s32.totalorder %s1018_s28, %s1018_s28 }
  0x13   :  { %p1025_p8 = por %p1024_p7, %p1023_p6 }
  0x15   :  { %p1026_p9 = pnand %p1025_p8, %p1019_p5 }
  0x17   :  { %1029 = shalt.err (!%p1026_p9)
}
  0x18   :  { %s1184_s29 = smov 128   ;;  %s1185_s30 = smov 8  }
  0x19   :  { %64 = dma.hbm_to_vmem [thread:$0]  %s1400_s3, 1024, %s59_s24, [#allocation9], %s1184_s29, %s1184_s29, %s1185_s30  }
  0x1a   :  { %s1186_s15 = smov [#allocation11]   ;;  %s1187_s17 = smov [#allocation2]  }
  0x1b   :  { %s84_s16 = sshll.u32 %s1186_s15, 4  ;;  %s29_s1 = sshll.u32 %s1187_s17, 4  ;;  %s85_s16 = int_to_ptr.vmem [resolvable:$true] %s84_s16  ;;  %s30_s1 = int_to_ptr.vmem [resolvable:$true] %s29_s1 }
  0x1c   :  { %s1038_s18 = scalar_lea.vmem %s85_s16, 2048  ;;  %p1043_p11 = scmp.lt.s32.totalorder %s85_s16, %s85_s16 }
  0x1d   :  { %p1039_p10 = scmp.ne.s32.totalorder %s85_s16, %s1038_s18  ;;  %p1044_p12 = scmp.lt.s32.totalorder %s1038_s18, %s1038_s18 }
  0x1f   :  { %p1045_p13 = por %p1044_p12, %p1043_p11 }
  0x21   :  { %p1046_p0 = pnand %p1045_p13, %p1039_p10 }
  0x23   :  { %1049 = shalt.err (!%p1046_p0)
}
  0x24   :  { %90 = dma.hbm_to_vmem [thread:$0]  %s1403_s6, 2048, %s85_s16, [#allocation12], %s1184_s29, %s1184_s29, %s1185_s30  }
  0x25   :  { %s1058_s3 = scalar_lea.vmem %s30_s1, 128  ;;  %p1063_p2 = scmp.lt.s32.totalorder %s30_s1, %s30_s1 }
  0x26   :  { %p1059_p1 = scmp.ne.s32.totalorder %s30_s1, %s1058_s3  ;;  %p1064_p3 = scmp.lt.s32.totalorder %s1058_s3, %s1058_s3 }
  0x28   :  { %p1065_p4 = por %p1064_p3, %p1063_p2 }
  0x2a   :  { %p1066_p5 = pnand %p1065_p4, %p1059_p1 }
  0x2c   :  { %1069 = shalt.err (!%p1066_p5)
}
  0x2d   :  { %32 = dma.hbm_to_vmem [thread:$0]  %s1397_s0, 128, %s30_s1, [#allocation3]  }
  0x2e   :  { %s1188_s23 = smov [#allocation7]   ;;  %s1189_s25 = smov [#allocation10]  }
  0x2f   :  { %s49_s24 = sshll.u32 %s1188_s23, 4  ;;  %s70_s26 = sshll.u32 %s1189_s25, 4  ;;  %s50_s24 = int_to_ptr.vmem [resolvable:$true] %s49_s24  ;;  %s71_s26 = int_to_ptr.vmem [resolvable:$true] %s70_s26 }
  0x30   :  { %s1078_s27 = scalar_lea.vmem %s50_s24, 128  ;;  %p1083_p7 = scmp.lt.s32.totalorder %s50_s24, %s50_s24 }
  0x31   :  { %p1079_p6 = scmp.ne.s32.totalorder %s50_s24, %s1078_s27  ;;  %p1084_p8 = scmp.lt.s32.totalorder %s1078_s27, %s1078_s27 }
  0x33   :  { %p1085_p9 = por %p1084_p8, %p1083_p7 }
  0x35   :  { %p1086_p10 = pnand %p1085_p9, %p1079_p6 }
  0x37   :  { %1089 = shalt.err (!%p1086_p10)
}
  0x38   :  { %52 = dma.hbm_to_vmem [thread:$0]  %s1399_s2, 128, %s50_s24, [#allocation6]  }
  0x39   :  { %s1098_s13 = scalar_lea.vmem %s71_s26, 512  ;;  %p1103_p12 = scmp.lt.s32.totalorder %s71_s26, %s71_s26 }
  0x3a   :  { %p1099_p11 = scmp.ne.s32.totalorder %s71_s26, %s1098_s13  ;;  %p1104_p13 = scmp.lt.s32.totalorder %s1098_s13, %s1098_s13 }
  0x3c   :  { %p1105_p0 = por %p1104_p13, %p1103_p12 }
  0x3e   :  { %p1106_p1 = pnand %p1105_p0, %p1099_p11 }
  0x40   :  { %1109 = shalt.err (!%p1106_p1)
}
  0x41   :  { %76 = dma.hbm_to_vmem [thread:$0]  %s1401_s4, 512, %s71_s26, [#allocation9], %s1184_s29, %s1184_s29, %s1185_s30  }
  0x42   :  { %s1190_s15 = smov [#allocation13]   ;;  %s1191_s17 = smov [#allocation14]  }
  0x43   :  { %s98_s16 = sshll.u32 %s1190_s15, 4  ;;  %s112_s1 = sshll.u32 %s1191_s17, 4  ;;  %s99_s16 = int_to_ptr.vmem [resolvable:$true] %s98_s16  ;;  %s113_s1 = int_to_ptr.vmem [resolvable:$true] %s112_s1 }
  0x44   :  { %s1118_s2 = scalar_lea.vmem %s99_s16, 2048  ;;  %p1123_p3 = scmp.lt.s32.totalorder %s99_s16, %s99_s16 }
  0x45   :  { %p1119_p2 = scmp.ne.s32.totalorder %s99_s16, %s1118_s2  ;;  %p1124_p4 = scmp.lt.s32.totalorder %s1118_s2, %s1118_s2 }
  0x47   :  { %p1125_p5 = por %p1124_p4, %p1123_p3 }
  0x49   :  { %p1126_p6 = pnand %p1125_p5, %p1119_p2 }
  0x4b   :  { %1129 = shalt.err (!%p1126_p6)
}
  0x4c   :  { %104 = dma.hbm_to_vmem [thread:$0]  %s1405_s8, 2048, %s99_s16, [#allocation12], %s1184_s29, %s1184_s29, %s1185_s30  }
  0x4d   :  { %s1138_s4 = scalar_lea.vmem %s113_s1, 2048  ;;  %p1143_p8 = scmp.lt.s32.totalorder %s113_s1, %s113_s1 }
  0x4e   :  { %p1139_p7 = scmp.ne.s32.totalorder %s113_s1, %s1138_s4  ;;  %p1144_p9 = scmp.lt.s32.totalorder %s1138_s4, %s1138_s4 }
  0x50   :  { %p1145_p10 = por %p1144_p9, %p1143_p8 }
  0x52   :  { %p1146_p11 = pnand %p1145_p10, %p1139_p7 }
  0x54   :  { %1149 = shalt.err (!%p1146_p11)
}
  0x55   :  { %118 = dma.hbm_to_vmem [thread:$0]  %s1407_s10, 2048, %s113_s1, [#allocation15], %s1184_s29, %s1184_s29, %s1185_s30  }
  0x56   :  { %1170 = dma.done.wait [#allocation3], 128  }
  0x57   :  { %1171 = vsyncadd [#allocation3], 4294967168 }
  0x58   :  { %1172 = dma.done.wait [#allocation6], 256  }
  0x59   :  { %1173 = vsyncadd [#allocation6], 4294967040 }
  0x5a   :  { %1174 = dma.done.wait [#allocation9], 1536  }
  0x5b   :  { %1175 = vsyncadd [#allocation9], 4294965760 }
  0x5c   :  { %1176 = dma.done.wait [#allocation12], 4096  }
  0x5d   :  { %1177 = vsyncadd [#allocation12], 4294963200 }
  0x5e   :  { %1178 = dma.done.wait [#allocation15], 2048  }
  0x5f   :  { %1179 = vsyncadd [#allocation15], 4294965248  ;;  %v1192_v0 = vmov 0   ;;  %v1193_v1 = vmov 2   ;;  %v1194_v2 = vmov 0.0   ;;  %v146_v3 = vld [vmem:[#allocation5] sm:$0xff]  ;;  %v147_v8 = vlaneseq }
  0x60   :  { %978 = vset.pattern.permute.xlu0 %v1192_v0  ;;  %980 = vset.pattern.permute.xlu1 %v1193_v1  ;;  %v1195_v4 = vmov 1   ;;  %v1196_v5 = vmov 3   ;;  %v1197_v6 = vmov 4   ;;  %v184_v7 = vld [vmem:[#allocation7] sm:$0xff]  ;;  %vm1198_vm0 = vmmov 0   ;;  %v269_v25 = vld [vmem:[#allocation10 + $0x10] sm:$0xff] }
  0x61   :  { %820 = vmatprep.subr.mxu0 %v1194_v2  ;;  %855 = vmatprep.subr.mxu1 %v1194_v2  ;;  %v148_v9 = vand.u32 127, %v147_v8  ;;  %vm185_vm6 = vcmask 64512   ;;  %v270_v24 = vld [vmem:[#allocation10 + $0x18] sm:$0xff]  ;;  %v268_v26 = vld [vmem:[#allocation10 + $0x8] sm:$0xff]  ;;  %v267_v27 = vld [vmem:[#allocation10] sm:$0xff]  ;;  %vm271_vm7 = vcmask 261120  }
  0x62   :  { %150 = vperm.xlu0 %978, %v146_v3   ;;  %164 = vperm.xlu1 %980, %v146_v3   ;;  %v266_v28 = vld [vmem:[#allocation8 + $0x38] sm:$0xff]  ;;  %v265_v30 = vld [vmem:[#allocation8 + $0x30] sm:$0xff]  ;;  %v264_v32 = vld [vmem:[#allocation8 + $0x28] sm:$0xff]  ;;  %vm345_vm8 = vcmask 523264   ;;  %s1199_s23 = smov [#allocation16]  }
  0x63   :  { %821 = vmatpush3.msra.mxu0 %v184_v7  ;;  %822 = vmatprep.mubr.msk.f32.mxu0 %vm1198_vm0, %v1194_v2  ;;  %v263_v33 = vld [vmem:[#allocation8 + $0x20] sm:$0xff]  ;;  %v262_v34 = vld [vmem:[#allocation8 + $0x18] sm:$0xff]  ;;  %v261_v35 = vld [vmem:[#allocation8 + $0x10] sm:$0xff]  ;;  %s728_s24 = sshll.u32 %s1199_s23, 4  ;;  %s729_s24 = int_to_ptr.vmem [resolvable:$true] %s728_s24 }
  0x64   :  { %825 = vmatprep.subr.mxu0 %v1194_v2  ;;  %887 = vmatprep.mubr.msk.f32.mxu1 %vm1198_vm0, %v1194_v2  ;;  %v260_v36 = vld [vmem:[#allocation8 + $0x8] sm:$0xff]  ;;  %v259_v37 = vld [vmem:[#allocation8] sm:$0xff]  ;;  %v447_v39 = vld [vmem:[#allocation11 + $0x78] sm:$0xff]  ;;  %p1155_p13 = scmp.lt.s32.totalorder %s729_s24, %s729_s24 }
  0x65   :  { %v145_v38 = vld [vmem:[#allocation2] sm:$0xff]  ;;  %v446_v40 = vld [vmem:[#allocation11 + $0x70] sm:$0xff]  ;;  %856 = vmatpush3.msra.mxu1 %v447_v39  ;;  %v444_v42 = vld [vmem:[#allocation11 + $0x60] sm:$0xff] }
  0x66   :  { %979 = vset.pattern.permute.xlu0 %v1195_v4  ;;  %981 = vset.pattern.permute.xlu1 %v1196_v5  ;;  %v445_v41 = vld [vmem:[#allocation11 + $0x68] sm:$0xff]  ;;  %v443_v43 = vld [vmem:[#allocation11 + $0x58] sm:$0xff]  ;;  %v442_v44 = vld [vmem:[#allocation11 + $0x50] sm:$0xff] }
  0x67   :  { %157 = vperm.xlu0 %979, %v146_v3   ;;  %171 = vperm.xlu1 %981, %v146_v3   ;;  %v441_v45 = vld [vmem:[#allocation11 + $0x48] sm:$0xff]  ;;  %v440_v46 = vld [vmem:[#allocation11 + $0x40] sm:$0xff]  ;;  %v439_v47 = vld [vmem:[#allocation11 + $0x38] sm:$0xff] }
  0x68   :  { %857 = vmatprep.subr.mxu1 %v1194_v2  ;;  %v438_v48 = vld [vmem:[#allocation11 + $0x30] sm:$0xff]  ;;  %v437_v49 = vld [vmem:[#allocation11 + $0x28] sm:$0xff]  ;;  %v436_v50 = vld [vmem:[#allocation11 + $0x20] sm:$0xff] }
  0x69   :  { %858 = vmatpush3.msra.mxu1 %v446_v40  ;;  %v435_v51 = vld [vmem:[#allocation11 + $0x18] sm:$0xff]  ;;  %v434_v52 = vld [vmem:[#allocation11 + $0x10] sm:$0xff]  ;;  %v433_v53 = vld [vmem:[#allocation11 + $0x8] sm:$0xff] }
  0x6a   :  { %859 = vmatprep.subr.mxu1 %v1194_v2  ;;  %v432_v54 = vld [vmem:[#allocation11] sm:$0xff]  ;;  %v545_v55 = vld [vmem:[#allocation13 + $0x78] sm:$0xff]  ;;  %v544_v56 = vld [vmem:[#allocation13 + $0x70] sm:$0xff] }
  0x6b   :  { %982 = vset.pattern.permute.xlu1 %v1197_v6  ;;  %983 = vset.pattern.permute.xlu0 %v1197_v6  ;;  %v543_v57 = vld [vmem:[#allocation13 + $0x68] sm:$0xff]  ;;  %v542_v58 = vld [vmem:[#allocation13 + $0x60] sm:$0xff]  ;;  %v541_v8 = vld [vmem:[#allocation13 + $0x58] sm:$0xff] }
  0x6c   :  { %178 = vperm.xlu1 %982, %v146_v3   ;;  %860 = vmatpush3.msra.mxu1 %v445_v41  ;;  %v749_v62 = vld [vmem:[%s1402_s5] ss:$0 sm:$0xff]  ;;  %v632_v40 = vld [vmem:[#allocation14 + $0x20] sm:$0xff]  ;;  %v631_v41 = vld [vmem:[#allocation14 + $0x18] sm:$0xff] }
  0x6d   :  { %861 = vmatprep.subr.mxu1 %v1194_v2  ;;  %v633_v39 = vld [vmem:[#allocation14 + $0x28] sm:$0xff] }
  0x6e   :  { %862 = vmatpush3.msra.mxu1 %v444_v42  ;;  %v630_v42 = vld [vmem:[#allocation14 + $0x10] sm:$0xff] }
  0x6f   :  { %863 = vmatprep.subr.mxu1 %v1194_v2 }
  0x70   :  { %864 = vmatpush3.msra.mxu1 %v443_v43  ;;  %v629_v43 = vld [vmem:[#allocation14 + $0x8] sm:$0xff] }
  0x71   :  { %865 = vmatprep.subr.mxu1 %v1194_v2 }
  0x72   :  { %866 = vmatpush3.msra.mxu1 %v442_v44  ;;  %v628_v44 = vld [vmem:[#allocation14] sm:$0xff] }
  0x73   :  { %867 = vmatprep.subr.mxu1 %v1194_v2 }
  0x74   :  { %868 = vmatpush3.msra.mxu1 %v441_v45  ;;  %v751_v45 = vld [vmem:[%s1406_s9] ss:$0 sm:$0xff]  ;;  %s1150_s9 = scalar_lea.vmem %s729_s24, 128 }
  0x75   :  { %869 = vmatprep.subr.mxu1 %v1194_v2  ;;  %p1151_p12 = scmp.ne.s32.totalorder %s729_s24, %s1150_s9  ;;  %p1156_p0 = scmp.lt.s32.totalorder %s1150_s9, %s1150_s9 }
  0x76   :  { %870 = vmatpush3.msra.mxu1 %v440_v46 }
  0x77   :  { %871 = vmatprep.subr.mxu1 %v1194_v2  ;;  %p1157_p1 = por %p1156_p0, %p1155_p13 }
  0x78   :  { %872 = vmatpush3.msra.mxu1 %v439_v47 }
  0x79   :  { %873 = vmatprep.subr.mxu1 %v1194_v2  ;;  %p1158_p2 = pnand %p1157_p1, %p1151_p12 }
  0x7a   :  { %874 = vmatpush3.msra.mxu1 %v438_v48 }
  0x7b   :  { %875 = vmatprep.subr.mxu1 %v1194_v2 }
  0x7c   :  { %876 = vmatpush3.msra.mxu1 %v437_v49 }
  0x7d   :  { %877 = vmatprep.subr.mxu1 %v1194_v2 }
  0x7e   :  { %878 = vmatpush3.msra.mxu1 %v436_v50 }
  0x7f   :  { %879 = vmatprep.subr.mxu1 %v1194_v2 }
  0x80   :  { %880 = vmatpush3.msra.mxu1 %v435_v51 }
  0x81   :  { %881 = vmatprep.subr.mxu1 %v1194_v2 }
  0x82   :  { %882 = vmatpush3.msra.mxu1 %v434_v52 }
  0x83   :  { %883 = vmatprep.subr.mxu1 %v1194_v2 }
  0x84   :  { %884 = vmatpush3.msra.mxu1 %v433_v53 }
  0x85   :  { %885 = vmatprep.subr.mxu1 %v1194_v2 }
  0x86   :  { %886 = vmatpush3.msra.mxu1 %v432_v54 }
  0x87   :  { %925 = vmatprep.subr.mxu1 %v1194_v2 }
  0xdd   :  { %v151_v10 = vpop.permute.xlu0 %150  ;;  %v165_v11 = vpop.permute.xlu1 %164 }
  0xde   :  { %vm152_vm1 = vcmp.eq.s32.totalorder %v151_v10, %v148_v9  ;;  %vm166_vm2 = vcmp.eq.s32.totalorder %v165_v11, %v148_v9  ;;  %v539_v10 = vld [vmem:[#allocation13 + $0x48] sm:$0xff]  ;;  %v538_v11 = vld [vmem:[#allocation13 + $0x40] sm:$0xff] }
  0xdf   :  { %v741_v14 = vsel %vm152_vm1, 1.0, %v1194_v2  ;;  %v743_v17 = vsel %vm166_vm2, 1.0, %v1194_v2 }
  0xe2   :  { %v158_v12 = vpop.permute.xlu0 %157  ;;  %v172_v13 = vpop.permute.xlu1 %171 }
  0xe3   :  { %vm159_vm3 = vcmp.eq.s32.totalorder %v158_v12, %v148_v9  ;;  %vm173_vm4 = vcmp.eq.s32.totalorder %v172_v13, %v148_v9  ;;  %v537_v12 = vld [vmem:[#allocation13 + $0x38] sm:$0xff]  ;;  %v536_v13 = vld [vmem:[#allocation13 + $0x30] sm:$0xff] }
  0xe4   :  { %v742_v15 = vsel %vm159_vm3, 1.0, %v1194_v2  ;;  %v744_v20 = vsel %vm173_vm4, 1.0, %v1194_v2 }
  0xe5   :  { %v162_v16 = vadd.f32 %v742_v15, %v741_v14  ;;  %v535_v14 = vld [vmem:[#allocation13 + $0x28] sm:$0xff]  ;;  %v534_v15 = vld [vmem:[#allocation13 + $0x20] sm:$0xff] }
  0xe7   :  { %v169_v18 = vadd.f32 %v743_v17, %v162_v16  ;;  %v179_v19 = vpop.permute.xlu1 %178  ;;  %v533_v16 = vld [vmem:[#allocation13 + $0x18] sm:$0xff]  ;;  %v532_v17 = vld [vmem:[#allocation13 + $0x10] sm:$0xff] }
  0xe8   :  { %vm180_vm5 = vcmp.eq.s32.totalorder %v179_v19, %v148_v9  ;;  %v540_v9 = vld [vmem:[#allocation13 + $0x50] sm:$0xff]  ;;  %v530_v19 = vld [vmem:[#allocation13] sm:$0xff] }
  0xe9   :  { %v176_v21 = vadd.f32 %v744_v20, %v169_v18  ;;  %v745_v22 = vsel %vm180_vm5, 1.0, %v1194_v2  ;;  %v531_v18 = vld [vmem:[#allocation13 + $0x8] sm:$0xff]  ;;  %v643_v20 = vld [vmem:[#allocation14 + $0x78] sm:$0xff] }
  0xeb   :  { %v183_v23 = vadd.f32 %v745_v22, %v176_v21  ;;  %v642_v21 = vld [vmem:[#allocation14 + $0x70] sm:$0xff]  ;;  %v641_v22 = vld [vmem:[#allocation14 + $0x68] sm:$0xff] }
  0xed   :  { %823 = vmatmul.mubr.msk.f32.vlgmr.msra.gmra.mxu0 %vm185_vm6, %v183_v23  ;;  %v640_v23 = vld [vmem:[#allocation14 + $0x60] sm:$0xff] }
  0xee   :  { %826 = vmatpush3.msra.mxu0 %v270_v24  ;;  %833 = vmatprep.mubr.msk.f32.mxu0 %vm1198_vm0, %v1194_v2  ;;  %v750_v24 = vld [vmem:[%s1404_s7] ss:$0 sm:$0xff] }
  0xef   :  { %827 = vmatprep.subr.mxu0 %v1194_v2 }
  0xf0   :  { %828 = vmatpush3.msra.mxu0 %v269_v25 }
  0xf1   :  { %829 = vmatprep.subr.mxu0 %v1194_v2 }
  0xf2   :  { %830 = vmatpush3.msra.mxu0 %v268_v26 }
  0xf3   :  { %831 = vmatprep.subr.mxu0 %v1194_v2 }
  0xf4   :  { %832 = vmatpush3.msra.mxu0 %v267_v27 }
  0xf5   :  { %836 = vmatprep.subr.mxu0 %v1194_v2 }
 0x1ad   :  { %v255_v29 = vpop.f32.mrf.mxu0 }
 0x1ae   :  { %834 = vmatmul.mubr.msk.f32.vlgmr.msra.gmra.mxu0 %vm271_vm7, %v255_v29 }
 0x1af   :  { %837 = vmatpush3.msra.mxu0 %v266_v28  ;;  %v824_v31 = vpop.f32.mrf.mxu0  ;;  %852 = vmatprep.mubr.msk.f32.mxu0 %vm1198_vm0, %v1194_v2 }
 0x1b0   :  { %838 = vmatprep.subr.mxu0 %v1194_v2 }
 0x1b1   :  { %839 = vmatpush3.msra.mxu0 %v265_v30 }
 0x1b2   :  { %840 = vmatprep.subr.mxu0 %v1194_v2 }
 0x1b3   :  { %841 = vmatpush3.msra.mxu0 %v264_v32 }
 0x1b4   :  { %842 = vmatprep.subr.mxu0 %v1194_v2 }
 0x1b5   :  { %843 = vmatpush3.msra.mxu0 %v263_v33  ;;  %v639_v33 = vld [vmem:[#allocation14 + $0x58] sm:$0xff] }
 0x1b6   :  { %844 = vmatprep.subr.mxu0 %v1194_v2 }
 0x1b7   :  { %845 = vmatpush3.msra.mxu0 %v262_v34  ;;  %v638_v34 = vld [vmem:[#allocation14 + $0x50] sm:$0xff] }
 0x1b8   :  { %846 = vmatprep.subr.mxu0 %v1194_v2 }
 0x1b9   :  { %847 = vmatpush3.msra.mxu0 %v261_v35  ;;  %v637_v35 = vld [vmem:[#allocation14 + $0x48] sm:$0xff] }
 0x1ba   :  { %848 = vmatprep.subr.mxu0 %v1194_v2 }
 0x1bb   :  { %849 = vmatpush3.msra.mxu0 %v260_v36  ;;  %v636_v36 = vld [vmem:[#allocation14 + $0x40] sm:$0xff] }
 0x1bc   :  { %850 = vmatprep.subr.mxu0 %v1194_v2 }
 0x1bd   :  { %851 = vmatpush3.msra.mxu0 %v259_v37  ;;  %v635_v37 = vld [vmem:[#allocation14 + $0x38] sm:$0xff] }
 0x1be   :  { %853 = vmatmul.mubr.msk.f32.vlgmr.msra.gmra.mxu0 %vm345_vm8, %v145_v38  ;;  %890 = vmatprep.subr.mxu0 %v1194_v2  ;;  %v634_v38 = vld [vmem:[#allocation14 + $0x30] sm:$0xff] }
 0x1bf   :  { %922 = vmatprep.mubr.msk.f32.mxu0 %vm1198_vm0, %v1194_v2  ;;  %891 = vmatpush3.msra.mxu0 %v545_v55 }
 0x1c0   :  { %892 = vmatprep.subr.mxu0 %v1194_v2 }
 0x1c1   :  { %893 = vmatpush3.msra.mxu0 %v544_v56 }
 0x1c2   :  { %894 = vmatprep.subr.mxu0 %v1194_v2 }
 0x1c3   :  { %895 = vmatpush3.msra.mxu0 %v543_v57 }
 0x1c4   :  { %896 = vmatprep.subr.mxu0 %v1194_v2 }
 0x1c5   :  { %897 = vmatpush3.msra.mxu0 %v542_v58 }
 0x1c6   :  { %898 = vmatprep.subr.mxu0 %v1194_v2 }
 0x1c7   :  { %899 = vmatpush3.msra.mxu0 %v541_v8 }
 0x1c8   :  { %900 = vmatprep.subr.mxu0 %v1194_v2 }
 0x1c9   :  { %901 = vmatpush3.msra.mxu0 %v540_v9 }
 0x1ca   :  { %902 = vmatprep.subr.mxu0 %v1194_v2 }
 0x1cb   :  { %903 = vmatpush3.msra.mxu0 %v539_v10 }
 0x1cc   :  { %904 = vmatprep.subr.mxu0 %v1194_v2 }
 0x1cd   :  { %905 = vmatpush3.msra.mxu0 %v538_v11 }
 0x1ce   :  { %906 = vmatprep.subr.mxu0 %v1194_v2 }
 0x1cf   :  { %907 = vmatpush3.msra.mxu0 %v537_v12 }
 0x1d0   :  { %908 = vmatprep.subr.mxu0 %v1194_v2 }
 0x1d1   :  { %909 = vmatpush3.msra.mxu0 %v536_v13 }
 0x1d2   :  { %910 = vmatprep.subr.mxu0 %v1194_v2 }
 0x1d3   :  { %911 = vmatpush3.msra.mxu0 %v535_v14 }
 0x1d4   :  { %912 = vmatprep.subr.mxu0 %v1194_v2 }
 0x1d5   :  { %913 = vmatpush3.msra.mxu0 %v534_v15 }
 0x1d6   :  { %914 = vmatprep.subr.mxu0 %v1194_v2 }
 0x1d7   :  { %915 = vmatpush3.msra.mxu0 %v533_v16 }
 0x1d8   :  { %916 = vmatprep.subr.mxu0 %v1194_v2 }
 0x1d9   :  { %917 = vmatpush3.msra.mxu0 %v532_v17 }
 0x1da   :  { %918 = vmatprep.subr.mxu0 %v1194_v2 }
 0x1db   :  { %919 = vmatpush3.msra.mxu0 %v531_v18 }
 0x1dc   :  { %920 = vmatprep.subr.mxu0 %v1194_v2 }
 0x1dd   :  { %921 = vmatpush3.msra.mxu0 %v530_v19 }
 0x26e   :  { %v341_v59 = vpop.f32.mrf.mxu0 }
 0x270   :  { %v835_v60 = vpop.f32.mrf.mxu0 }
 0x27e   :  { %v415_v61 = vpop.f32.mrf.mxu0 }
 0x27f   :  { %v416_v63 = vadd.f32 %v415_v61, %v341_v59 }
 0x280   :  { %v854_v0 = vpop.f32.mrf.mxu0 }
 0x281   :  { %v426_v1 = vadd.f32 %v749_v62, %v416_v63 }
 0x283   :  { %v428_v3 = vmul.f32 0.70710677, %v426_v1  ;;  %v427_v5 = vmul.f32 0.5, %v426_v1 }
 0x285   :  { %984 = verf.f32 %v428_v3 }
 0x292   :  { %v985_v4 = vpop.eup %984 }
 0x293   :  { %v430_v6 = vadd.f32 1.0, %v985_v4 }
 0x295   :  { %v431_v7 = vmul.f32 %v430_v6, %v427_v5 }
 0x297   :  { %888 = vmatmul.mubr.f32.vlgmr.msra.gmra.mxu1 %v431_v7 }
 0x298   :  { %957 = vmatprep.mubr.msk.f32.mxu1 %vm1198_vm0, %v1194_v2  ;;  %926 = vmatpush3.msra.mxu1 %v643_v20 }
 0x299   :  { %927 = vmatprep.subr.mxu1 %v1194_v2 }
 0x29a   :  { %928 = vmatpush3.msra.mxu1 %v642_v21 }
 0x29b   :  { %929 = vmatprep.subr.mxu1 %v1194_v2 }
 0x29c   :  { %930 = vmatpush3.msra.mxu1 %v641_v22 }
 0x29d   :  { %931 = vmatprep.subr.mxu1 %v1194_v2 }
 0x29e   :  { %932 = vmatpush3.msra.mxu1 %v640_v23 }
 0x29f   :  { %933 = vmatprep.subr.mxu1 %v1194_v2 }
 0x2a0   :  { %934 = vmatpush3.msra.mxu1 %v639_v33 }
 0x2a1   :  { %935 = vmatprep.subr.mxu1 %v1194_v2 }
 0x2a2   :  { %936 = vmatpush3.msra.mxu1 %v638_v34 }
 0x2a3   :  { %937 = vmatprep.subr.mxu1 %v1194_v2 }
 0x2a4   :  { %938 = vmatpush3.msra.mxu1 %v637_v35 }
 0x2a5   :  { %939 = vmatprep.subr.mxu1 %v1194_v2 }
 0x2a6   :  { %940 = vmatpush3.msra.mxu1 %v636_v36 }
 0x2a7   :  { %941 = vmatprep.subr.mxu1 %v1194_v2 }
 0x2a8   :  { %942 = vmatpush3.msra.mxu1 %v635_v37 }
 0x2a9   :  { %943 = vmatprep.subr.mxu1 %v1194_v2 }
 0x2aa   :  { %944 = vmatpush3.msra.mxu1 %v634_v38 }
 0x2ab   :  { %945 = vmatprep.subr.mxu1 %v1194_v2 }
 0x2ac   :  { %946 = vmatpush3.msra.mxu1 %v633_v39 }
 0x2ad   :  { %947 = vmatprep.subr.mxu1 %v1194_v2 }
 0x2ae   :  { %948 = vmatpush3.msra.mxu1 %v632_v40 }
 0x2af   :  { %949 = vmatprep.subr.mxu1 %v1194_v2 }
 0x2b0   :  { %950 = vmatpush3.msra.mxu1 %v631_v41 }
 0x2b1   :  { %951 = vmatprep.subr.mxu1 %v1194_v2 }
 0x2b2   :  { %952 = vmatpush3.msra.mxu1 %v630_v42 }
 0x2b3   :  { %953 = vmatprep.subr.mxu1 %v1194_v2 }
 0x2b4   :  { %954 = vmatpush3.msra.mxu1 %v629_v43 }
 0x2b5   :  { %955 = vmatprep.subr.mxu1 %v1194_v2  ;;  %v752_v2 = vld [vmem:[%s1408_s11] ss:$0 sm:$0xff] }
 0x2b6   :  { %956 = vmatpush3.msra.mxu1 %v628_v44 }
 0x357   :  { %v521_v25 = vpop.f32.mrf.mxu1 }
 0x358   :  { %v522_v26 = vadd.f32 %v750_v24, %v521_v25 }
 0x359   :  { %v889_v27 = vpop.f32.mrf.mxu1 }
 0x35a   :  { %v526_v28 = vmul.f32 0.70710677, %v522_v26  ;;  %v525_v30 = vmul.f32 0.5, %v522_v26 }
 0x35c   :  { %986 = verf.f32 %v526_v28 }
 0x369   :  { %v987_v29 = vpop.eup %986 }
 0x36a   :  { %v528_v31 = vadd.f32 1.0, %v987_v29 }
 0x36c   :  { %v529_v32 = vmul.f32 %v528_v31, %v525_v30 }
 0x36e   :  { %923 = vmatmul.mubr.f32.vlgmr.msra.gmra.mxu0 %v529_v32 }
 0x42e   :  { %v619_v46 = vpop.f32.mrf.mxu0 }
 0x42f   :  { %v620_v47 = vadd.f32 %v751_v45, %v619_v46 }
 0x430   :  { %v924_v48 = vpop.f32.mrf.mxu0 }
 0x431   :  { %v624_v49 = vmul.f32 0.70710677, %v620_v47  ;;  %v623_v51 = vmul.f32 0.5, %v620_v47 }
 0x433   :  { %988 = verf.f32 %v624_v49 }
 0x440   :  { %v989_v50 = vpop.eup %988 }
 0x441   :  { %v626_v52 = vadd.f32 1.0, %v989_v50 }
 0x443   :  { %v627_v53 = vmul.f32 %v626_v52, %v623_v51 }
 0x445   :  { %958 = vmatmul.mubr.f32.vlgmr.msra.gmra.mxu1 %v627_v53 }
 0x505   :  { %v717_v54 = vpop.f32.mrf.mxu1 }
 0x506   :  { %v718_v55 = vadd.f32 %v752_v2, %v717_v54 }
 0x507   :  { %v959_v56 = vpop.f32.mrf.mxu1 }
 0x508   :  { %721 = vst [vmem:[#allocation16] sm:$0xff] %v718_v55 }
 0x509   :  { %1161 = shalt.err (!%p1158_p2)
}
 0x50a   :  { %731 = dma.vmem_to_hbm [thread:$0]  %s729_s24, 128, %s1409_s12, [#allocation4]  }
 0x50b   :  { %1180 = dma.done.wait [#allocation4], 128  }
 0x50c   :  { %1181 = vsyncadd [#allocation4], 4294967168 }
 0x50d   :  { %735 = vsyncpa [#allocation3], 1 }
 0x50e   :  { %736 = vsyncpa [#allocation6], 1 }
 0x50f   :  { %737 = vsyncpa [#allocation9], 1 }
 0x510   :  { %738 = vsyncpa [#allocation12], 1 }
 0x511   :  { %739 = vsyncpa [#allocation15], 1 }
 0x512   :  { %740 = vsyncpa [#allocation4], 1 }

</bundles_post_ra>
